<compile_context>
chip_gen: v6e
topology: v6e:2x2x1
jax: 0.10.0
libtpu: 0.0.40
codegen_flags: <defaults>
</compile_context>

<pallas_src>
import jax
import jax.numpy as jnp
from jax.experimental import pallas as pl
from jax.experimental.pallas import tpu as pltpu


def lstm_head_fused_kernel(x_ref, h0_ref, c0_ref, wih_ref, whh_ref, b_ref,
                           wh_ref, bh_ref, g_ref, beta_ref,
                           y_ref, hT_ref, cT_ref):
    TB, D = x_ref.shape                      # (T*Bp, D), time-major flattened
    Bp, H = h0_ref.shape
    T = TB // Bp
    A = y_ref.shape[-1]

    # (1) Input projection for ALL timesteps in one MXU call (f32, biases folded).
    xg = jnp.dot(x_ref[...], wih_ref[...],
                 preferred_element_type=jnp.float32) + b_ref[...]   # (T*Bp, 4H)

    # Recurrent weights cast to bf16 once (MXU is bf16-native); state stays f32.
    w_hh = whh_ref[...].astype(jnp.bfloat16)                        # (H, 4H)

    h = h0_ref[...].astype(jnp.float32)                             # (Bp, H) in vregs
    c = c0_ref[...].astype(jnp.float32)

    # (2) LSTM recurrence, fully unrolled; gate order here is [i, f, o, g]
    #     (columns were permuted in the wrapper), so sigmoid covers a contiguous
    #     3H band and tanh the trailing H band. Everything stays in registers.
    h_steps = []
    for t in range(T):
        gates = xg[t * Bp:(t + 1) * Bp, :] + jnp.dot(
            h.astype(jnp.bfloat16), w_hh, preferred_element_type=jnp.float32)
        sig = jax.nn.sigmoid(gates[:, :3 * H])                      # i, f, o bands (f32)
        i_g = sig[:, 0:H]
        f_g = sig[:, H:2 * H]
        o_g = sig[:, 2 * H:3 * H]
        g_g = jnp.tanh(gates[:, 3 * H:4 * H])
        c = f_g * c + i_g * g_g
        h = o_g * jnp.tanh(c)
        h_steps.append(h)

    # Final hidden / cell state written exactly once.
    hT_ref[...] = h.astype(hT_ref.dtype)
    cT_ref[...] = c.astype(cT_ref.dtype)

    # (3) Batched head: one (T*Bp, H) x (H, A) matmul + LayerNorm + tanh + ONE store.
    h_all = jnp.concatenate(h_steps, axis=0)                        # (T*Bp, H)
    z = jnp.dot(h_all, wh_ref[...], preferred_element_type=jnp.float32) + bh_ref[...]
    mu = jnp.mean(z, axis=-1, keepdims=True)
    var = jnp.mean((z - mu) ** 2, axis=-1, keepdims=True)
    zn = (z - mu) * jax.lax.rsqrt(var + 1e-5)
    y_ref[...] = jnp.tanh(zn * g_ref[...] + beta_ref[...]).astype(y_ref.dtype)


def _round_up(n, m):
    return ((n + m - 1) // m) * m


def prepare_params(raw):
    """PyTorch-layout tensors -> kernel-ready params (transpose, bias fold,
    gate-column reorder [i,f,g,o] -> [i,f,o,g]). Trace-time / one-off."""
    H = raw["w_hh"].shape[1]
    perm = jnp.concatenate([jnp.arange(0, H), jnp.arange(H, 2 * H),
                            jnp.arange(3 * H, 4 * H), jnp.arange(2 * H, 3 * H)])
    return {
        "w_ih_t": raw["w_ih"].T[:, perm],                  # (D, 4H)
        "w_hh_t": raw["w_hh"].T[:, perm],                  # (H, 4H)
        "b_sum": (raw["b_ih"] + raw["b_hh"])[perm][None, :],   # (1, 4H)
        "w_head_t": raw["w_head"].T,                       # (H, A)
        "b_head": raw["b_head"][None, :],                  # (1, A)
        "ln_g": raw["ln_g"][None, :],                      # (1, A)
        "ln_b": raw["ln_b"][None, :],                      # (1, A)
    }


def inverse_dynamics_forward(x, hs, target_shape, params):
    """x: (B, T, D) float32, hs = (h0, c0) each (1, B, H)."""
    B, T, D = x.shape
    h0, c0 = hs
    H = params["w_hh_t"].shape[0]
    A = params["w_head_t"].shape[1]

    # Pad batch to sublane width (8) so all (B, .) tiles are sublane-aligned.
    Bp = max(_round_up(B, 8), 8)
    pad = Bp - B

    # Time-major, batch-padded, flattened to 2-D in XLA (free; kernel stays 2-D).
    x_tm = jnp.transpose(x, (1, 0, 2))                     # (T, B, D)
    if pad:
        x_tm = jnp.pad(x_tm, ((0, 0), (0, pad), (0, 0)))
        h0p = jnp.pad(h0[0], ((0, pad), (0, 0)))
        c0p = jnp.pad(c0[0], ((0, pad), (0, 0)))
    else:
        h0p, c0p = h0[0], c0[0]
    x_flat = x_tm.reshape(T * Bp, D)

    vmem = pl.BlockSpec(memory_space=pltpu.MemorySpace.VMEM)
    in_specs = [vmem] * 10
    out_specs = (vmem, vmem, vmem)
    out_shapes = (
        jax.ShapeDtypeStruct((T * Bp, A), jnp.float32),    # y (time-major, flat)
        jax.ShapeDtypeStruct((Bp, H), jnp.float32),        # h_n
        jax.ShapeDtypeStruct((Bp, H), jnp.float32),        # c_n
    )

    flops = (2 * T * Bp * D * 4 * H            # input projection
             + 2 * T * Bp * H * 4 * H          # recurrent matmuls
             + 2 * T * Bp * H * A)             # head matmul
    transcendentals = T * Bp * (3 * H + 2 * H + A + 1)     # sigmoid + 2 tanh + head tanh + rsqrt
    bytes_accessed = 4 * (x_flat.size + h0p.size + c0p.size
                          + params["w_ih_t"].size + params["w_hh_t"].size
                          + params["b_sum"].size + params["w_head_t"].size
                          + params["b_head"].size + params["ln_g"].size
                          + params["ln_b"].size
                          + T * Bp * A + 2 * Bp * H)

    y_flat, h_n, c_n = pl.pallas_call(
        lstm_head_fused_kernel,
        out_shape=out_shapes,
        in_specs=in_specs,
        out_specs=out_specs,
        cost_estimate=pl.CostEstimate(
            flops=flops,
            transcendentals=transcendentals,
            bytes_accessed=bytes_accessed),
    )(x_flat, h0p, c0p,
      params["w_ih_t"], params["w_hh_t"], params["b_sum"],
      params["w_head_t"], params["b_head"], params["ln_g"], params["ln_b"])

    y = y_flat.reshape(T, Bp, A)[:, :B, :]
    out = jnp.transpose(y, (1, 0, 2)).reshape(target_shape)
    return out, (h_n[:B][None], c_n[:B][None])


def reference_forward(x, hs, target_shape, raw):
    """Pure-JAX f32 reference mirroring the PyTorch module (gate order i,f,g,o)."""
    B, T, D = x.shape
    h = hs[0][0]
    c = hs[1][0]
    H = raw["w_hh"].shape[1]
    w_ih_t = raw["w_ih"].T
    w_hh_t = raw["w_hh"].T
    b = raw["b_ih"] + raw["b_hh"]
    ys = []
    for t in range(T):
        gates = x[:, t, :] @ w_ih_t + h @ w_hh_t + b
        i_g = jax.nn.sigmoid(gates[:, 0:H])
        f_g = jax.nn.sigmoid(gates[:, H:2 * H])
        g_g = jnp.tanh(gates[:, 2 * H:3 * H])
        o_g = jax.nn.sigmoid(gates[:, 3 * H:4 * H])
        c = f_g * c + i_g * g_g
        h = o_g * jnp.tanh(c)
        ys.append(h)
    out = jnp.stack(ys, axis=1).reshape(-1, H)
    z = out @ raw["w_head"].T + raw["b_head"]
    mu = jnp.mean(z, axis=-1, keepdims=True)
    var = jnp.mean((z - mu) ** 2, axis=-1, keepdims=True)
    z = (z - mu) * jax.lax.rsqrt(var + 1e-5) * raw["ln_g"] + raw["ln_b"]
    return jnp.tanh(z).reshape(target_shape), (h[None], c[None])


if __name__ == "__main__":
    # Small shapes consistent with the module.
    B, T = 2, 8
    obs_dim, act_dim, hidden = 8, 4, 32
    D = obs_dim * 2

    key = jax.random.PRNGKey(0)
    ks = jax.random.split(key, 12)

    # Deterministic synthetic parameters (shapes match nn.LSTM / nn.Linear / nn.LayerNorm).
    raw = {
        "w_ih": jax.random.normal(ks[0], (4 * hidden, D), jnp.float32) * 0.1,
        "w_hh": jax.random.normal(ks[1], (4 * hidden, hidden), jnp.float32) * 0.1,
        "b_ih": jax.random.normal(ks[2], (4 * hidden,), jnp.float32) * 0.1,
        "b_hh": jax.random.normal(ks[3], (4 * hidden,), jnp.float32) * 0.1,
        "w_head": jax.random.normal(ks[4], (act_dim, hidden), jnp.float32) * 0.1,
        "b_head": jax.random.normal(ks[5], (act_dim,), jnp.float32) * 0.1,
        "ln_g": jnp.ones((act_dim,), jnp.float32),
        "ln_b": jnp.zeros((act_dim,), jnp.float32),
    }
    params = prepare_params(raw)

    x = jax.random.normal(ks[6], (B, T, D), jnp.float32)
    h0 = jax.random.normal(ks[7], (1, B, hidden), jnp.float32) * 0.1
    c0 = jax.random.normal(ks[8], (1, B, hidden), jnp.float32) * 0.1
    target_shape = (B, T, act_dim)

    out, (h_n, c_n) = inverse_dynamics_forward(x, (h0, c0), target_shape, params)
    out = jax.block_until_ready(out)
    h_n = jax.block_until_ready(h_n)
    c_n = jax.block_until_ready(c_n)

    out_ref, (h_ref, c_ref) = reference_forward(x, (h0, c0), target_shape, raw)
    assert out.shape == target_shape and h_n.shape == (1, B, hidden)
    # Tolerance loosened vs the f32-only kernel: the recurrent matmul now uses
    # bf16 operands (f32 accumulation / f32 state), giving ~1e-3-level drift
    # over T=8 vs the pure-f32 reference.
    TOL = 2e-2
    assert jnp.allclose(out, out_ref, atol=TOL), "output mismatch vs reference"
    assert jnp.allclose(h_n, h_ref, atol=TOL), "h_n mismatch vs reference"
    assert jnp.allclose(c_n, c_ref, atol=TOL), "c_n mismatch vs reference"

    print("KERNEL_OK")
</pallas_src>

<mosaic_0001>
module attributes {stable_mosaic.version = 11 : i64} {
  func.func @lstm_head_fused_kernel(%arg0: memref<64x16xf32, #tpu.memory_space<vmem>>, %arg1: memref<8x32xf32, #tpu.memory_space<vmem>>, %arg2: memref<8x32xf32, #tpu.memory_space<vmem>>, %arg3: memref<16x128xf32, #tpu.memory_space<vmem>>, %arg4: memref<32x128xf32, #tpu.memory_space<vmem>>, %arg5: memref<1x128xf32, #tpu.memory_space<vmem>>, %arg6: memref<32x4xf32, #tpu.memory_space<vmem>>, %arg7: memref<1x4xf32, #tpu.memory_space<vmem>>, %arg8: memref<1x4xf32, #tpu.memory_space<vmem>>, %arg9: memref<1x4xf32, #tpu.memory_space<vmem>>, %arg10: memref<64x4xf32, #tpu.memory_space<vmem>>, %arg11: memref<8x32xf32, #tpu.memory_space<vmem>>, %arg12: memref<8x32xf32, #tpu.memory_space<vmem>>) attributes {dimension_semantics = [], scalar_prefetch = 0 : i64, scratch_operands = 0 : i64, tpu.core_type = #tpu.core_type<tc>} {
    %c0 = arith.constant 0 : index
    %c0_0 = arith.constant 0 : index
    %0 = vector.load %arg0[%c0, %c0_0] : memref<64x16xf32, #tpu.memory_space<vmem>>, vector<64x16xf32>
    %c0_1 = arith.constant 0 : index
    %c0_2 = arith.constant 0 : index
    %1 = vector.load %arg3[%c0_1, %c0_2] : memref<16x128xf32, #tpu.memory_space<vmem>>, vector<16x128xf32>
    %cst = arith.constant dense<0.000000e+00> : vector<64x128xf32>
    %2 = tpu.matmul %0, %1, %cst {dimension_numbers = #tpu.dot_dimension_numbers<[1], [0], [0], [1], [0, 0, 1, 1], [], []>} : vector<64x16xf32>, vector<16x128xf32>, vector<64x128xf32> -> vector<64x128xf32>
    %c0_3 = arith.constant 0 : index
    %c0_4 = arith.constant 0 : index
    %3 = vector.load %arg5[%c0_3, %c0_4] : memref<1x128xf32, #tpu.memory_space<vmem>>, vector<1x128xf32>
    %4 = vector.broadcast %3 : vector<1x128xf32> to vector<64x128xf32>
    %5 = arith.addf %2, %4 : vector<64x128xf32>
    %c0_5 = arith.constant 0 : index
    %c0_6 = arith.constant 0 : index
    %6 = vector.load %arg4[%c0_5, %c0_6] : memref<32x128xf32, #tpu.memory_space<vmem>>, vector<32x128xf32>
    %7 = arith.truncf %6 : vector<32x128xf32> to vector<32x128xbf16>
    %c0_7 = arith.constant 0 : index
    %c0_8 = arith.constant 0 : index
    %8 = vector.load %arg1[%c0_7, %c0_8] : memref<8x32xf32, #tpu.memory_space<vmem>>, vector<8x32xf32>
    %c0_9 = arith.constant 0 : index
    %c0_10 = arith.constant 0 : index
    %9 = vector.load %arg2[%c0_9, %c0_10] : memref<8x32xf32, #tpu.memory_space<vmem>>, vector<8x32xf32>
    %10 = vector.extract_strided_slice %5 {offsets = [0, 0], sizes = [8, 128], strides = [1, 1]} : vector<64x128xf32> to vector<8x128xf32>
    %11 = arith.truncf %8 : vector<8x32xf32> to vector<8x32xbf16>
    %cst_11 = arith.constant dense<0.000000e+00> : vector<8x128xf32>
    %12 = tpu.matmul %11, %7, %cst_11 {dimension_numbers = #tpu.dot_dimension_numbers<[1], [0], [0], [1], [0, 0, 1, 1], [], []>} : vector<8x32xbf16>, vector<32x128xbf16>, vector<8x128xf32> -> vector<8x128xf32>
    %13 = arith.addf %10, %12 : vector<8x128xf32>
    %14 = vector.extract_strided_slice %13 {offsets = [0, 0], sizes = [8, 96], strides = [1, 1]} : vector<8x128xf32> to vector<8x96xf32>
    %15 = arith.negf %14 : vector<8x96xf32>
    %16 = math.exp %15 : vector<8x96xf32>
    %cst_12 = arith.constant 1.000000e+00 : f32
    %17 = vector.broadcast %cst_12 : f32 to vector<8x96xf32>
    %18 = arith.addf %17, %16 : vector<8x96xf32>
    %19 = arith.divf %17, %18 : vector<8x96xf32>
    %20 = vector.extract_strided_slice %19 {offsets = [0, 0], sizes = [8, 32], strides = [1, 1]} : vector<8x96xf32> to vector<8x32xf32>
    %21 = vector.extract_strided_slice %19 {offsets = [0, 32], sizes = [8, 32], strides = [1, 1]} : vector<8x96xf32> to vector<8x32xf32>
    %22 = vector.extract_strided_slice %19 {offsets = [0, 64], sizes = [8, 32], strides = [1, 1]} : vector<8x96xf32> to vector<8x32xf32>
    %23 = vector.extract_strided_slice %13 {offsets = [0, 96], sizes = [8, 32], strides = [1, 1]} : vector<8x128xf32> to vector<8x32xf32>
    %24 = math.tanh %23 : vector<8x32xf32>
    %25 = arith.mulf %21, %9 : vector<8x32xf32>
    %26 = arith.mulf %20, %24 : vector<8x32xf32>
    %27 = arith.addf %25, %26 : vector<8x32xf32>
    %28 = math.tanh %27 : vector<8x32xf32>
    %29 = arith.mulf %22, %28 : vector<8x32xf32>
    %30 = vector.extract_strided_slice %5 {offsets = [8, 0], sizes = [8, 128], strides = [1, 1]} : vector<64x128xf32> to vector<8x128xf32>
    %31 = arith.truncf %29 : vector<8x32xf32> to vector<8x32xbf16>
    %cst_13 = arith.constant dense<0.000000e+00> : vector<8x128xf32>
    %32 = tpu.matmul %31, %7, %cst_13 {dimension_numbers = #tpu.dot_dimension_numbers<[1], [0], [0], [1], [0, 0, 1, 1], [], []>} : vector<8x32xbf16>, vector<32x128xbf16>, vector<8x128xf32> -> vector<8x128xf32>
    %33 = arith.addf %30, %32 : vector<8x128xf32>
    %34 = vector.extract_strided_slice %33 {offsets = [0, 0], sizes = [8, 96], strides = [1, 1]} : vector<8x128xf32> to vector<8x96xf32>
    %35 = arith.negf %34 : vector<8x96xf32>
    %36 = math.exp %35 : vector<8x96xf32>
    %cst_14 = arith.constant 1.000000e+00 : f32
    %37 = vector.broadcast %cst_14 : f32 to vector<8x96xf32>
    %38 = arith.addf %37, %36 : vector<8x96xf32>
    %39 = arith.divf %37, %38 : vector<8x96xf32>
    %40 = vector.extract_strided_slice %39 {offsets = [0, 0], sizes = [8, 32], strides = [1, 1]} : vector<8x96xf32> to vector<8x32xf32>
    %41 = vector.extract_strided_slice %39 {offsets = [0, 32], sizes = [8, 32], strides = [1, 1]} : vector<8x96xf32> to vector<8x32xf32>
    %42 = vector.extract_strided_slice %39 {offsets = [0, 64], sizes = [8, 32], strides = [1, 1]} : vector<8x96xf32> to vector<8x32xf32>
    %43 = vector.extract_strided_slice %33 {offsets = [0, 96], sizes = [8, 32], strides = [1, 1]} : vector<8x128xf32> to vector<8x32xf32>
    %44 = math.tanh %43 : vector<8x32xf32>
    %45 = arith.mulf %41, %27 : vector<8x32xf32>
    %46 = arith.mulf %40, %44 : vector<8x32xf32>
    %47 = arith.addf %45, %46 : vector<8x32xf32>
    %48 = math.tanh %47 : vector<8x32xf32>
    %49 = arith.mulf %42, %48 : vector<8x32xf32>
    %50 = vector.extract_strided_slice %5 {offsets = [16, 0], sizes = [8, 128], strides = [1, 1]} : vector<64x128xf32> to vector<8x128xf32>
    %51 = arith.truncf %49 : vector<8x32xf32> to vector<8x32xbf16>
    %cst_15 = arith.constant dense<0.000000e+00> : vector<8x128xf32>
    %52 = tpu.matmul %51, %7, %cst_15 {dimension_numbers = #tpu.dot_dimension_numbers<[1], [0], [0], [1], [0, 0, 1, 1], [], []>} : vector<8x32xbf16>, vector<32x128xbf16>, vector<8x128xf32> -> vector<8x128xf32>
    %53 = arith.addf %50, %52 : vector<8x128xf32>
    %54 = vector.extract_strided_slice %53 {offsets = [0, 0], sizes = [8, 96], strides = [1, 1]} : vector<8x128xf32> to vector<8x96xf32>
    %55 = arith.negf %54 : vector<8x96xf32>
    %56 = math.exp %55 : vector<8x96xf32>
    %cst_16 = arith.constant 1.000000e+00 : f32
    %57 = vector.broadcast %cst_16 : f32 to vector<8x96xf32>
    %58 = arith.addf %57, %56 : vector<8x96xf32>
    %59 = arith.divf %57, %58 : vector<8x96xf32>
    %60 = vector.extract_strided_slice %59 {offsets = [0, 0], sizes = [8, 32], strides = [1, 1]} : vector<8x96xf32> to vector<8x32xf32>
    %61 = vector.extract_strided_slice %59 {offsets = [0, 32], sizes = [8, 32], strides = [1, 1]} : vector<8x96xf32> to vector<8x32xf32>
    %62 = vector.extract_strided_slice %59 {offsets = [0, 64], sizes = [8, 32], strides = [1, 1]} : vector<8x96xf32> to vector<8x32xf32>
    %63 = vector.extract_strided_slice %53 {offsets = [0, 96], sizes = [8, 32], strides = [1, 1]} : vector<8x128xf32> to vector<8x32xf32>
    %64 = math.tanh %63 : vector<8x32xf32>
    %65 = arith.mulf %61, %47 : vector<8x32xf32>
    %66 = arith.mulf %60, %64 : vector<8x32xf32>
    %67 = arith.addf %65, %66 : vector<8x32xf32>
    %68 = math.tanh %67 : vector<8x32xf32>
    %69 = arith.mulf %62, %68 : vector<8x32xf32>
    %70 = vector.extract_strided_slice %5 {offsets = [24, 0], sizes = [8, 128], strides = [1, 1]} : vector<64x128xf32> to vector<8x128xf32>
    %71 = arith.truncf %69 : vector<8x32xf32> to vector<8x32xbf16>
    %cst_17 = arith.constant dense<0.000000e+00> : vector<8x128xf32>
    %72 = tpu.matmul %71, %7, %cst_17 {dimension_numbers = #tpu.dot_dimension_numbers<[1], [0], [0], [1], [0, 0, 1, 1], [], []>} : vector<8x32xbf16>, vector<32x128xbf16>, vector<8x128xf32> -> vector<8x128xf32>
    %73 = arith.addf %70, %72 : vector<8x128xf32>
    %74 = vector.extract_strided_slice %73 {offsets = [0, 0], sizes = [8, 96], strides = [1, 1]} : vector<8x128xf32> to vector<8x96xf32>
    %75 = arith.negf %74 : vector<8x96xf32>
    %76 = math.exp %75 : vector<8x96xf32>
    %cst_18 = arith.constant 1.000000e+00 : f32
    %77 = vector.broadcast %cst_18 : f32 to vector<8x96xf32>
    %78 = arith.addf %77, %76 : vector<8x96xf32>
    %79 = arith.divf %77, %78 : vector<8x96xf32>
    %80 = vector.extract_strided_slice %79 {offsets = [0, 0], sizes = [8, 32], strides = [1, 1]} : vector<8x96xf32> to vector<8x32xf32>
    %81 = vector.extract_strided_slice %79 {offsets = [0, 32], sizes = [8, 32], strides = [1, 1]} : vector<8x96xf32> to vector<8x32xf32>
    %82 = vector.extract_strided_slice %79 {offsets = [0, 64], sizes = [8, 32], strides = [1, 1]} : vector<8x96xf32> to vector<8x32xf32>
    %83 = vector.extract_strided_slice %73 {offsets = [0, 96], sizes = [8, 32], strides = [1, 1]} : vector<8x128xf32> to vector<8x32xf32>
    %84 = math.tanh %83 : vector<8x32xf32>
    %85 = arith.mulf %81, %67 : vector<8x32xf32>
    %86 = arith.mulf %80, %84 : vector<8x32xf32>
    %87 = arith.addf %85, %86 : vector<8x32xf32>
    %88 = math.tanh %87 : vector<8x32xf32>
    %89 = arith.mulf %82, %88 : vector<8x32xf32>
    %90 = vector.extract_strided_slice %5 {offsets = [32, 0], sizes = [8, 128], strides = [1, 1]} : vector<64x128xf32> to vector<8x128xf32>
    %91 = arith.truncf %89 : vector<8x32xf32> to vector<8x32xbf16>
    %cst_19 = arith.constant dense<0.000000e+00> : vector<8x128xf32>
    %92 = tpu.matmul %91, %7, %cst_19 {dimension_numbers = #tpu.dot_dimension_numbers<[1], [0], [0], [1], [0, 0, 1, 1], [], []>} : vector<8x32xbf16>, vector<32x128xbf16>, vector<8x128xf32> -> vector<8x128xf32>
    %93 = arith.addf %90, %92 : vector<8x128xf32>
    %94 = vector.extract_strided_slice %93 {offsets = [0, 0], sizes = [8, 96], strides = [1, 1]} : vector<8x128xf32> to vector<8x96xf32>
    %95 = arith.negf %94 : vector<8x96xf32>
    %96 = math.exp %95 : vector<8x96xf32>
    %cst_20 = arith.constant 1.000000e+00 : f32
    %97 = vector.broadcast %cst_20 : f32 to vector<8x96xf32>
    %98 = arith.addf %97, %96 : vector<8x96xf32>
    %99 = arith.divf %97, %98 : vector<8x96xf32>
    %100 = vector.extract_strided_slice %99 {offsets = [0, 0], sizes = [8, 32], strides = [1, 1]} : vector<8x96xf32> to vector<8x32xf32>
    %101 = vector.extract_strided_slice %99 {offsets = [0, 32], sizes = [8, 32], strides = [1, 1]} : vector<8x96xf32> to vector<8x32xf32>
    %102 = vector.extract_strided_slice %99 {offsets = [0, 64], sizes = [8, 32], strides = [1, 1]} : vector<8x96xf32> to vector<8x32xf32>
    %103 = vector.extract_strided_slice %93 {offsets = [0, 96], sizes = [8, 32], strides = [1, 1]} : vector<8x128xf32> to vector<8x32xf32>
    %104 = math.tanh %103 : vector<8x32xf32>
    %105 = arith.mulf %101, %87 : vector<8x32xf32>
    %106 = arith.mulf %100, %104 : vector<8x32xf32>
    %107 = arith.addf %105, %106 : vector<8x32xf32>
    %108 = math.tanh %107 : vector<8x32xf32>
    %109 = arith.mulf %102, %108 : vector<8x32xf32>
    %110 = vector.extract_strided_slice %5 {offsets = [40, 0], sizes = [8, 128], strides = [1, 1]} : vector<64x128xf32> to vector<8x128xf32>
    %111 = arith.truncf %109 : vector<8x32xf32> to vector<8x32xbf16>
    %cst_21 = arith.constant dense<0.000000e+00> : vector<8x128xf32>
    %112 = tpu.matmul %111, %7, %cst_21 {dimension_numbers = #tpu.dot_dimension_numbers<[1], [0], [0], [1], [0, 0, 1, 1], [], []>} : vector<8x32xbf16>, vector<32x128xbf16>, vector<8x128xf32> -> vector<8x128xf32>
    %113 = arith.addf %110, %112 : vector<8x128xf32>
    %114 = vector.extract_strided_slice %113 {offsets = [0, 0], sizes = [8, 96], strides = [1, 1]} : vector<8x128xf32> to vector<8x96xf32>
    %115 = arith.negf %114 : vector<8x96xf32>
    %116 = math.exp %115 : vector<8x96xf32>
    %cst_22 = arith.constant 1.000000e+00 : f32
    %117 = vector.broadcast %cst_22 : f32 to vector<8x96xf32>
    %118 = arith.addf %117, %116 : vector<8x96xf32>
    %119 = arith.divf %117, %118 : vector<8x96xf32>
    %120 = vector.extract_strided_slice %119 {offsets = [0, 0], sizes = [8, 32], strides = [1, 1]} : vector<8x96xf32> to vector<8x32xf32>
    %121 = vector.extract_strided_slice %119 {offsets = [0, 32], sizes = [8, 32], strides = [1, 1]} : vector<8x96xf32> to vector<8x32xf32>
    %122 = vector.extract_strided_slice %119 {offsets = [0, 64], sizes = [8, 32], strides = [1, 1]} : vector<8x96xf32> to vector<8x32xf32>
    %123 = vector.extract_strided_slice %113 {offsets = [0, 96], sizes = [8, 32], strides = [1, 1]} : vector<8x128xf32> to vector<8x32xf32>
    %124 = math.tanh %123 : vector<8x32xf32>
    %125 = arith.mulf %121, %107 : vector<8x32xf32>
    %126 = arith.mulf %120, %124 : vector<8x32xf32>
    %127 = arith.addf %125, %126 : vector<8x32xf32>
    %128 = math.tanh %127 : vector<8x32xf32>
    %129 = arith.mulf %122, %128 : vector<8x32xf32>
    %130 = vector.extract_strided_slice %5 {offsets = [48, 0], sizes = [8, 128], strides = [1, 1]} : vector<64x128xf32> to vector<8x128xf32>
    %131 = arith.truncf %129 : vector<8x32xf32> to vector<8x32xbf16>
    %cst_23 = arith.constant dense<0.000000e+00> : vector<8x128xf32>
    %132 = tpu.matmul %131, %7, %cst_23 {dimension_numbers = #tpu.dot_dimension_numbers<[1], [0], [0], [1], [0, 0, 1, 1], [], []>} : vector<8x32xbf16>, vector<32x128xbf16>, vector<8x128xf32> -> vector<8x128xf32>
    %133 = arith.addf %130, %132 : vector<8x128xf32>
    %134 = vector.extract_strided_slice %133 {offsets = [0, 0], sizes = [8, 96], strides = [1, 1]} : vector<8x128xf32> to vector<8x96xf32>
    %135 = arith.negf %134 : vector<8x96xf32>
    %136 = math.exp %135 : vector<8x96xf32>
    %cst_24 = arith.constant 1.000000e+00 : f32
    %137 = vector.broadcast %cst_24 : f32 to vector<8x96xf32>
    %138 = arith.addf %137, %136 : vector<8x96xf32>
    %139 = arith.divf %137, %138 : vector<8x96xf32>
    %140 = vector.extract_strided_slice %139 {offsets = [0, 0], sizes = [8, 32], strides = [1, 1]} : vector<8x96xf32> to vector<8x32xf32>
    %141 = vector.extract_strided_slice %139 {offsets = [0, 32], sizes = [8, 32], strides = [1, 1]} : vector<8x96xf32> to vector<8x32xf32>
    %142 = vector.extract_strided_slice %139 {offsets = [0, 64], sizes = [8, 32], strides = [1, 1]} : vector<8x96xf32> to vector<8x32xf32>
    %143 = vector.extract_strided_slice %133 {offsets = [0, 96], sizes = [8, 32], strides = [1, 1]} : vector<8x128xf32> to vector<8x32xf32>
    %144 = math.tanh %143 : vector<8x32xf32>
    %145 = arith.mulf %141, %127 : vector<8x32xf32>
    %146 = arith.mulf %140, %144 : vector<8x32xf32>
    %147 = arith.addf %145, %146 : vector<8x32xf32>
    %148 = math.tanh %147 : vector<8x32xf32>
    %149 = arith.mulf %142, %148 : vector<8x32xf32>
    %150 = vector.extract_strided_slice %5 {offsets = [56, 0], sizes = [8, 128], strides = [1, 1]} : vector<64x128xf32> to vector<8x128xf32>
    %151 = arith.truncf %149 : vector<8x32xf32> to vector<8x32xbf16>
    %cst_25 = arith.constant dense<0.000000e+00> : vector<8x128xf32>
    %152 = tpu.matmul %151, %7, %cst_25 {dimension_numbers = #tpu.dot_dimension_numbers<[1], [0], [0], [1], [0, 0, 1, 1], [], []>} : vector<8x32xbf16>, vector<32x128xbf16>, vector<8x128xf32> -> vector<8x128xf32>
    %153 = arith.addf %150, %152 : vector<8x128xf32>
    %154 = vector.extract_strided_slice %153 {offsets = [0, 0], sizes = [8, 96], strides = [1, 1]} : vector<8x128xf32> to vector<8x96xf32>
    %155 = arith.negf %154 : vector<8x96xf32>
    %156 = math.exp %155 : vector<8x96xf32>
    %cst_26 = arith.constant 1.000000e+00 : f32
    %157 = vector.broadcast %cst_26 : f32 to vector<8x96xf32>
    %158 = arith.addf %157, %156 : vector<8x96xf32>
    %159 = arith.divf %157, %158 : vector<8x96xf32>
    %160 = vector.extract_strided_slice %159 {offsets = [0, 0], sizes = [8, 32], strides = [1, 1]} : vector<8x96xf32> to vector<8x32xf32>
    %161 = vector.extract_strided_slice %159 {offsets = [0, 32], sizes = [8, 32], strides = [1, 1]} : vector<8x96xf32> to vector<8x32xf32>
    %162 = vector.extract_strided_slice %159 {offsets = [0, 64], sizes = [8, 32], strides = [1, 1]} : vector<8x96xf32> to vector<8x32xf32>
    %163 = vector.extract_strided_slice %153 {offsets = [0, 96], sizes = [8, 32], strides = [1, 1]} : vector<8x128xf32> to vector<8x32xf32>
    %164 = math.tanh %163 : vector<8x32xf32>
    %165 = arith.mulf %161, %147 : vector<8x32xf32>
    %166 = arith.mulf %160, %164 : vector<8x32xf32>
    %167 = arith.addf %165, %166 : vector<8x32xf32>
    %168 = math.tanh %167 : vector<8x32xf32>
    %169 = arith.mulf %162, %168 : vector<8x32xf32>
    %c0_27 = arith.constant 0 : index
    %c0_28 = arith.constant 0 : index
    %170 = vector.load %arg11[%c0_27, %c0_28] : memref<8x32xf32, #tpu.memory_space<vmem>>, vector<8x32xf32>
    tpu.vector_store %arg11[%c0_27, %c0_28], %169 {strides = array<i32>} : memref<8x32xf32, #tpu.memory_space<vmem>>, vector<8x32xf32>,
    %c0_29 = arith.constant 0 : index
    %c0_30 = arith.constant 0 : index
    %171 = vector.load %arg12[%c0_29, %c0_30] : memref<8x32xf32, #tpu.memory_space<vmem>>, vector<8x32xf32>
    tpu.vector_store %arg12[%c0_29, %c0_30], %167 {strides = array<i32>} : memref<8x32xf32, #tpu.memory_space<vmem>>, vector<8x32xf32>,
    %172 = tpu.concatenate %29, %49, %69, %89, %109, %129, %149, %169 in 0 : vector<8x32xf32>, vector<8x32xf32>, vector<8x32xf32>, vector<8x32xf32>, vector<8x32xf32>, vector<8x32xf32>, vector<8x32xf32>, vector<8x32xf32> -> vector<64x32xf32>
    %c0_31 = arith.constant 0 : index
    %c0_32 = arith.constant 0 : index
    %173 = vector.load %arg6[%c0_31, %c0_32] : memref<32x4xf32, #tpu.memory_space<vmem>>, vector<32x4xf32>
    %cst_33 = arith.constant dense<0.000000e+00> : vector<64x4xf32>
    %174 = tpu.matmul %172, %173, %cst_33 {dimension_numbers = #tpu.dot_dimension_numbers<[1], [0], [0], [1], [0, 0, 1, 1], [], []>} : vector<64x32xf32>, vector<32x4xf32>, vector<64x4xf32> -> vector<64x4xf32>
    %c0_34 = arith.constant 0 : index
    %c0_35 = arith.constant 0 : index
    %175 = vector.load %arg7[%c0_34, %c0_35] : memref<1x4xf32, #tpu.memory_space<vmem>>, vector<1x4xf32>
    %176 = vector.broadcast %175 : vector<1x4xf32> to vector<64x4xf32>
    %177 = arith.addf %174, %176 : vector<64x4xf32>
    %cst_36 = arith.constant dense<0.000000e+00> : vector<64xf32>
    %178 = vector.multi_reduction <add>, %177, %cst_36 [1] : vector<64x4xf32> to vector<64xf32>
    %179 = vector.shape_cast %178 : vector<64xf32> to vector<64x1xf32>
    %cst_37 = arith.constant 4.000000e+00 : f32
    %180 = vector.broadcast %cst_37 : f32 to vector<64x1xf32>
    %181 = arith.divf %179, %180 : vector<64x1xf32>
    %182 = vector.broadcast %181 : vector<64x1xf32> to vector<64x4xf32>
    %183 = arith.subf %177, %182 : vector<64x4xf32>
    %184 = arith.mulf %183, %183 : vector<64x4xf32>
    %cst_38 = arith.constant dense<0.000000e+00> : vector<64xf32>
    %185 = vector.multi_reduction <add>, %184, %cst_38 [1] : vector<64x4xf32> to vector<64xf32>
    %186 = vector.shape_cast %185 : vector<64xf32> to vector<64x1xf32>
    %cst_39 = arith.constant 4.000000e+00 : f32
    %187 = vector.broadcast %cst_39 : f32 to vector<64x1xf32>
    %188 = arith.divf %186, %187 : vector<64x1xf32>
    %189 = vector.broadcast %181 : vector<64x1xf32> to vector<64x4xf32>
    %190 = arith.subf %177, %189 : vector<64x4xf32>
    %cst_40 = arith.constant 9.99999974E-6 : f32
    %191 = vector.broadcast %cst_40 : f32 to vector<64x1xf32>
    %192 = arith.addf %188, %191 : vector<64x1xf32>
    %193 = math.rsqrt %192 : vector<64x1xf32>
    %194 = vector.broadcast %193 : vector<64x1xf32> to vector<64x4xf32>
    %195 = arith.mulf %190, %194 : vector<64x4xf32>
    %c0_41 = arith.constant 0 : index
    %c0_42 = arith.constant 0 : index
    %196 = vector.load %arg8[%c0_41, %c0_42] : memref<1x4xf32, #tpu.memory_space<vmem>>, vector<1x4xf32>
    %197 = vector.broadcast %196 : vector<1x4xf32> to vector<64x4xf32>
    %198 = arith.mulf %195, %197 : vector<64x4xf32>
    %c0_43 = arith.constant 0 : index
    %c0_44 = arith.constant 0 : index
    %199 = vector.load %arg9[%c0_43, %c0_44] : memref<1x4xf32, #tpu.memory_space<vmem>>, vector<1x4xf32>
    %200 = vector.broadcast %199 : vector<1x4xf32> to vector<64x4xf32>
    %201 = arith.addf %198, %200 : vector<64x4xf32>
    %202 = math.tanh %201 : vector<64x4xf32>
    %c0_45 = arith.constant 0 : index
    %c0_46 = arith.constant 0 : index
    %203 = vector.load %arg10[%c0_45, %c0_46] : memref<64x4xf32, #tpu.memory_space<vmem>>, vector<64x4xf32>
    tpu.vector_store %arg10[%c0_45, %c0_46], %202 {strides = array<i32>} : memref<64x4xf32, #tpu.memory_space<vmem>>, vector<64x4xf32>,
    return
  }
}

</mosaic_0001>

<bundles_post_ra>
// kernel: tpu_custom_call.1
= control target key start
LH: loop header
LB: loop body
LE: loop exit
PB: predicated region body
PF: predicated region fallthrough
CT: control target
= control target key end

     0   :  { %18 = vsyncpa [#allocation3], 0  ;;  %vm58_vm0 = vcmask 130048   ;;  %s1886_s0 = inlined_call_operand.vmem [shape: f32[64,16], index: 0, kind: input, shape index: {}]   ;;  %s1887_s1 = inlined_call_operand.vmem [shape: f32[8,32], index: 1, kind: input, shape index: {}]   ;;  %s1888_s2 = inlined_call_operand.vmem [shape: f32[8,32], index: 2, kind: input, shape index: {}]   ;;  %s1889_s3 = inlined_call_operand.vmem [shape: f32[16,128], index: 3, kind: input, shape index: {}]   ;;  %s1890_s4 = inlined_call_operand.vmem [shape: f32[32,128], index: 4, kind: input, shape index: {}]   ;;  %s1891_s5 = inlined_call_operand.vmem [shape: f32[1,128], index: 5, kind: input, shape index: {}]   ;;  %s1892_s6 = inlined_call_operand.vmem [shape: f32[32,4], index: 6, kind: input, shape index: {}]   ;;  %s1893_s7 = inlined_call_operand.vmem [shape: f32[1,4], index: 7, kind: input, shape index: {}]   ;;  %s1894_s8 = inlined_call_operand.vmem [shape: f32[1,4], index: 8, kind: input, shape index: {}]   ;;  %s1895_s9 = inlined_call_operand.vmem [shape: f32[1,4], index: 9, kind: input, shape index: {}]   ;;  %s1896_s10 = inlined_call_operand.vmem [shape: f32[64,4], index: 10, kind: output, shape index: {0}]   ;;  %s1897_s11 = inlined_call_operand.hbm [shape: f32[8,32], index: 11, kind: output, shape index: {1}]   ;;  %s1898_s12 = inlined_call_operand.hbm [shape: f32[8,32], index: 12, kind: output, shape index: {2}]  }
   0x1   :  { %v50_v0 = vld [vmem:[%s1889_s3 + $0x8] sm:$0xff]  ;;  %v49_v1 = vld [vmem:[%s1889_s3] sm:$0xff]  ;;  %v190_v3 = vld [vmem:[%s1890_s4 + $0x10] sm:$0xff] }
   0x2   :  { %v45_v2 = vld [vmem:[%s1886_s0 + $0x20] sm:$0xff]  ;;  %1303 = vmatprep.subr.mxu1 %v50_v0  ;;  %1203 = vmatprep.subr.mxu0 %v50_v0  ;;  %v191_v4 = vld [vmem:[%s1890_s4 + $0x18] sm:$0xff]  ;;  %v46_v5 = vld [vmem:[%s1886_s0 + $0x28] sm:$0xff] }
   0x3   :  { %1305 = vmatpush3.msra.mxu1 %v50_v0  ;;  %1213 = vmatprep.mubr.msk.f32.mxu1 %vm58_vm0, %v45_v2  ;;  %v1545_v6 = vpack.c.bf16 %v191_v4, %v190_v3  ;;  %v188_v7 = vld [vmem:[%s1890_s4] sm:$0xff]  ;;  %v189_v8 = vld [vmem:[%s1890_s4 + $0x8] sm:$0xff]  ;;  %v47_v10 = vld [vmem:[%s1886_s0 + $0x30] sm:$0xff] }
   0x4   :  { %1304 = vmatprep.subr.mxu1 %v49_v1  ;;  %1204 = vmatpush3.msra.mxu0 %v50_v0  ;;  %v41_v9 = vld [vmem:[%s1886_s0] sm:$0xff] }
   0x5   :  { %1306 = vmatpush3.msra.mxu1 %v49_v1  ;;  %1205 = vmatprep.subr.mxu0 %v49_v1 }
   0x6   :  { %19 = vsyncpa [#allocation5], 0  ;;  %1214 = vmatmul.mubr.msk.f32.vlgmr.msra.gmra.mxu1 %vm58_vm0, %v46_v5  ;;  %v1454_v11 = vmov 0.0   ;;  %v42_v12 = vld [vmem:[%s1886_s0 + $0x8] sm:$0xff]  ;;  %1206 = vmatpush3.msra.mxu0 %v49_v1  ;;  %v48_v13 = vld [vmem:[%s1886_s0 + $0x38] sm:$0xff]  ;;  %v1568_v14 = vpack.c.bf16 %v189_v8, %v188_v7  ;;  %vm1455_vm1 = vmmov 0  }
   0x7   :  { %1219 = vmatprep.subr.bf16.mxu1 %v1454_v11  ;;  %v194_v15 = vld [vmem:[%s1887_s1] sm:$0xff]  ;;  %1207 = vmatprep.mubr.msk.f32.mxu0 %vm58_vm0, %v41_v9  ;;  %vm197_vm2 = vcmask 261120   ;;  %s1456_s28 = smov 32   ;;  %v43_v63 = vld [vmem:[%s1886_s0 + $0x10] sm:$0xff]  ;;  %v44_v0 = vld [vmem:[%s1886_s0 + $0x18] sm:$0xff]  ;;  %vm937_vm3 = vcmask 31744  }
   0x8   :  { %1220 = vmatpush3.bf16.msra.mxu1 %v1545_v6  ;;  %1216 = vmatprep.mubr.msk.f32.mxu1 %vm58_vm0, %v47_v10  ;;  %v196_v16 = vpack.c.bf16 %v194_v15, %v194_v15  ;;  %v1603_v22 = vld [vmem:[%s1891_s5] ss:$0 sm:$0xff] }
   0x9   :  { %1208 = vmatmul.mubr.msk.f32.vlgmr.msra.gmra.mxu0 %vm58_vm0, %v42_v12  ;;  %1221 = vmatprep.subr.bf16.mxu1 %v1454_v11  ;;  %v195_v31 = vld [vmem:[%s1888_s2] sm:$0xff]  ;;  %s1457_s2 = smov 64  }
   0xa   :  { %1217 = vmatmul.mubr.msk.f32.gmra.mxu1 %vm58_vm0, %v48_v13  ;;  %1235 = vmatprep.subr.bf16.mxu0 %v1454_v11 }
   0xb   :  { %1223 = vmatprep.mubr.msk.bf16.mxu1 %vm1455_vm1, %v1454_v11  ;;  %1236 = vmatpush3.bf16.msra.mxu0 %v1545_v6 }
   0xc   :  { %1222 = vmatpush3.bf16.msra.mxu1 %v1568_v14  ;;  %1237 = vmatprep.subr.bf16.mxu0 %v1454_v11 }
   0xd   :  { %1227 = vmatprep.subr.bf16.mxu1 %v1454_v11  ;;  %1210 = vmatprep.mubr.msk.f32.mxu0 %vm58_vm0, %v43_v63 }
   0xe   :  { %1211 = vmatmul.mubr.msk.f32.gmra.mxu0 %vm58_vm0, %v44_v0 }
   0xf   :  { %1224 = vmatmul.mubr.msk.bf16.vlgmr.msra.gmra.mxu1 %vm197_vm2, %v196_v16  ;;  %1238 = vmatpush3.bf16.msra.mxu0 %v1568_v14 }
  0x10   :  { %1228 = vmatpush3.bf16.msra.mxu1 %v1545_v6  ;;  %1231 = vmatprep.mubr.msk.bf16.mxu1 %vm1455_vm1, %v1454_v11 }
  0x11   :  { %1229 = vmatprep.subr.bf16.mxu1 %v1454_v11  ;;  %1251 = vmatprep.subr.bf16.mxu0 %v1454_v11 }
  0x12   :  { %1239 = vmatprep.mubr.msk.bf16.mxu0 %vm1455_vm1, %v1454_v11 }
  0x14   :  { %1230 = vmatpush3.bf16.msra.mxu1 %v1568_v14 }
  0x15   :  { %1243 = vmatprep.subr.bf16.mxu1 %v1454_v11 }
  0xc6   :  { %v1594_v17 = vpop.f32.mrf.mxu1 }
  0xc8   :  { %v1596_v18 = vpop.f32.mrf.mxu1 }
  0xc9   :  { %v1209_v19 = vpop.f32.mrf.mxu0 }
  0xca   :  { %v1598_v20 = vpop.f32.mrf.mxu1  ;;  %v155_v47 = vadd.f32 %v1209_v19, %v1603_v22 }
  0xcb   :  { %v149_v21 = vpop.f32.mrf.mxu0 }
  0xcc   :  { %v1605_v23 = vpop.f32.mrf.mxu1  ;;  %v150_v24 = vadd.f32 %v1603_v22, %v149_v21 }
  0xce   :  { %v1212_v7 = vpop.f32.mrf.mxu0 }
  0xcf   :  { %v235_v25 = vpop.f32.mrf.mxu1 }
  0xd0   :  { %v241_v26 = vadd.f32 %v235_v25, %v150_v24  ;;  %v159_v8 = vpop.f32.mrf.mxu0 }
  0xd1   :  { %v1225_v27 = vpop.f32.mrf.mxu1  ;;  %v160_v9 = vadd.f32 %v1603_v22, %v159_v8 }
  0xd2   :  { %1314 = vtanh.f32 %v241_v26  ;;  %v1131_v32 = vmul.f32 -1.442695, %v241_v26 }
  0xd3   :  { %v238_v28 = vpop.f32.mrf.mxu1 }
  0xd4   :  { %1316 = vpow2.f32 %v1131_v32 }
  0xd5   :  { %v1226_v29 = vpop.f32.mrf.mxu1 }
  0xdf   :  { %v1315_v30 = vpop.eup %1314 }
  0xe0   :  { %255 = vrot.lane.b32.xlu0 %v1315_v30, %s1456_s28 }
  0xe1   :  { %v1317_v33 = vpop.eup %1316 }
  0xe2   :  { %v245_v34 = vadd.f32 1.0, %v1317_v33 }
  0xe4   :  { %250 = vrot.lane.b32.xlu0 %v195_v31, %s1456_s28  ;;  %1318 = vrcp.f32 %v245_v34 }
  0xf1   :  { %v1319_v35 = vpop.eup %1318 }
 0x152   :  { %v256_v36 = vpop.permute.xlu0 %255 }
 0x153   :  { %v258_v37 = vmul.f32 %v1319_v35, %v256_v36 }
 0x155   :  { %260 = vrot.lane.b32.xlu1 %v258_v37, %s1456_s28  ;;  %v165_v37 = vadd.f32 %v1212_v7, %v1603_v22 }
 0x156   :  { %v251_v38 = vpop.permute.xlu0 %250 }
 0x157   :  { %v253_v39 = vmul.f32 %v1319_v35, %v251_v38 }
 0x1c7   :  { %v261_v40 = vpop.permute.xlu1 %260 }
 0x1c8   :  { %v263_v41 = vadd.f32 %v261_v40, %v253_v39 }
 0x1ca   :  { %1320 = vtanh.f32 %v263_v41 }
 0x1d7   :  { %v1321_v42 = vpop.eup %1320 }
 0x1d8   :  { %266 = vrot.lane.b32.xlu1 %v1321_v42, %s1456_s28 }
 0x24a   :  { %v267_v43 = vpop.permute.xlu1 %266 }
 0x24b   :  { %v1615_v44 = vmul.f32 %v1319_v35, %v267_v43 }
 0x24d   :  { %v270_v45 = vpack.c.bf16 %v1615_v44, %v1615_v44 }
 0x24f   :  { %272 = vrot.lane.b32.xlu0 %v270_v45, %s1457_s2 }
 0x2c1   :  { %v273_v46 = vpop.permute.xlu0 %272 }
 0x2c2   :  { %1232 = vmatmul.mubr.msk.bf16.vlgmr.msra.gmra.mxu1 %vm197_vm2, %v273_v46 }
 0x2c3   :  { %1244 = vmatpush3.bf16.msra.mxu1 %v1545_v6  ;;  %1247 = vmatprep.mubr.msk.bf16.mxu1 %vm1455_vm1, %v1454_v11 }
 0x2c4   :  { %1245 = vmatprep.subr.bf16.mxu1 %v1454_v11 }
 0x2c7   :  { %1246 = vmatpush3.bf16.msra.mxu1 %v1568_v14 }
 0x2c8   :  { %1259 = vmatprep.subr.bf16.mxu1 %v1454_v11 }
 0x382   :  { %v311_v48 = vpop.f32.mrf.mxu1 }
 0x383   :  { %v317_v49 = vadd.f32 %v311_v48, %v155_v47 }
 0x384   :  { %v1233_v50 = vpop.f32.mrf.mxu1 }
 0x385   :  { %1322 = vtanh.f32 %v317_v49  ;;  %v1133_v54 = vmul.f32 -1.442695, %v317_v49 }
 0x386   :  { %v314_v51 = vpop.f32.mrf.mxu1 }
 0x387   :  { %1324 = vpow2.f32 %v1133_v54 }
 0x388   :  { %v1234_v52 = vpop.f32.mrf.mxu1 }
 0x392   :  { %v1323_v53 = vpop.eup %1322 }
 0x393   :  { %327 = vrot.lane.b32.xlu1 %v1323_v53, %s1456_s28 }
 0x394   :  { %v1325_v55 = vpop.eup %1324 }
 0x395   :  { %v321_v56 = vadd.f32 1.0, %v1325_v55 }
 0x397   :  { %1326 = vrcp.f32 %v321_v56 }
 0x3a4   :  { %v1327_v57 = vpop.eup %1326 }
 0x3a5   :  { %v325_v60 = vmul.f32 %v1327_v57, %v263_v41 }
 0x405   :  { %v328_v58 = vpop.permute.xlu1 %327 }
 0x406   :  { %v330_v59 = vmul.f32 %v1327_v57, %v328_v58 }
 0x408   :  { %332 = vrot.lane.b32.xlu0 %v330_v59, %s1456_s28  ;;  %v170_v59 = vadd.f32 %v1603_v22, %v1596_v18 }
 0x47a   :  { %v333_v61 = vpop.permute.xlu0 %332 }
 0x47b   :  { %v335_v62 = vadd.f32 %v333_v61, %v325_v60 }
 0x47d   :  { %1328 = vtanh.f32 %v335_v62 }
 0x48a   :  { %v1329_v1 = vpop.eup %1328 }
 0x48b   :  { %338 = vrot.lane.b32.xlu1 %v1329_v1, %s1456_s28 }
 0x4fd   :  { %v339_v2 = vpop.permute.xlu1 %338 }
 0x4fe   :  { %v1641_v3 = vmul.f32 %v1327_v57, %v339_v2 }
 0x500   :  { %v342_v4 = vpack.c.bf16 %v1641_v3, %v1641_v3 }
 0x502   :  { %344 = vrot.lane.b32.xlu0 %v342_v4, %s1457_s2 }
 0x574   :  { %v345_v5 = vpop.permute.xlu0 %344 }
 0x575   :  { %1240 = vmatmul.mubr.msk.bf16.vlgmr.msra.gmra.mxu0 %vm197_vm2, %v345_v5 }
 0x576   :  { %1252 = vmatpush3.bf16.msra.mxu0 %v1545_v6  ;;  %1255 = vmatprep.mubr.msk.bf16.mxu0 %vm1455_vm1, %v1454_v11 }
 0x577   :  { %1253 = vmatprep.subr.bf16.mxu0 %v1454_v11 }
 0x57a   :  { %1254 = vmatpush3.bf16.msra.mxu0 %v1568_v14 }
 0x57b   :  { %1267 = vmatprep.subr.bf16.mxu0 %v1454_v11 }
 0x635   :  { %v383_v10 = vpop.f32.mrf.mxu0 }
 0x636   :  { %v389_v12 = vadd.f32 %v383_v10, %v160_v9 }
 0x637   :  { %v1241_v13 = vpop.f32.mrf.mxu0 }
 0x638   :  { %1330 = vtanh.f32 %v389_v12  ;;  %v1135_v21 = vmul.f32 -1.442695, %v389_v12 }
 0x639   :  { %v386_v15 = vpop.f32.mrf.mxu0 }
 0x63a   :  { %1332 = vpow2.f32 %v1135_v21 }
 0x63b   :  { %v1242_v16 = vpop.f32.mrf.mxu0 }
 0x645   :  { %v1331_v19 = vpop.eup %1330 }
 0x646   :  { %399 = vrot.lane.b32.xlu1 %v1331_v19, %s1456_s28 }
 0x647   :  { %v1333_v24 = vpop.eup %1332 }
 0x648   :  { %v393_v25 = vadd.f32 1.0, %v1333_v24  ;;  %v175_v24 = vadd.f32 %v1594_v17, %v1603_v22 }
 0x64a   :  { %1334 = vrcp.f32 %v393_v25 }
 0x657   :  { %v1335_v26 = vpop.eup %1334 }
 0x658   :  { %v397_v29 = vmul.f32 %v1335_v26, %v335_v62 }
 0x6b8   :  { %v400_v27 = vpop.permute.xlu1 %399 }
 0x6b9   :  { %v402_v28 = vmul.f32 %v1335_v26, %v400_v27 }
 0x6bb   :  { %404 = vrot.lane.b32.xlu0 %v402_v28, %s1456_s28 }
 0x72d   :  { %v405_v30 = vpop.permute.xlu0 %404 }
 0x72e   :  { %v407_v31 = vadd.f32 %v405_v30, %v397_v29 }
 0x730   :  { %1336 = vtanh.f32 %v407_v31 }
 0x73d   :  { %v1337_v32 = vpop.eup %1336 }
 0x73e   :  { %410 = vrot.lane.b32.xlu1 %v1337_v32, %s1456_s28 }
 0x7b0   :  { %v411_v33 = vpop.permute.xlu1 %410 }
 0x7b1   :  { %v1657_v34 = vmul.f32 %v1335_v26, %v411_v33 }
 0x7b3   :  { %v414_v35 = vpack.c.bf16 %v1657_v34, %v1657_v34 }
 0x7b5   :  { %416 = vrot.lane.b32.xlu0 %v414_v35, %s1457_s2 }
 0x827   :  { %v417_v36 = vpop.permute.xlu0 %416 }
 0x828   :  { %1248 = vmatmul.mubr.msk.bf16.vlgmr.msra.gmra.mxu1 %vm197_vm2, %v417_v36 }
 0x829   :  { %1260 = vmatpush3.bf16.msra.mxu1 %v1545_v6  ;;  %1263 = vmatprep.mubr.msk.bf16.mxu1 %vm1455_vm1, %v1454_v11 }
 0x82a   :  { %1261 = vmatprep.subr.bf16.mxu1 %v1454_v11 }
 0x82d   :  { %1262 = vmatpush3.bf16.msra.mxu1 %v1568_v14 }
 0x82e   :  { %1275 = vmatprep.subr.bf16.mxu1 %v1454_v11 }
 0x8e8   :  { %v455_v38 = vpop.f32.mrf.mxu1 }
 0x8e9   :  { %v461_v39 = vadd.f32 %v455_v38, %v165_v37 }
 0x8ea   :  { %v1249_v40 = vpop.f32.mrf.mxu1 }
 0x8eb   :  { %1338 = vtanh.f32 %v461_v39  ;;  %v1137_v45 = vmul.f32 -1.442695, %v461_v39 }
 0x8ec   :  { %v458_v41 = vpop.f32.mrf.mxu1 }
 0x8ed   :  { %1340 = vpow2.f32 %v1137_v45 }
 0x8ee   :  { %v1250_v42 = vpop.f32.mrf.mxu1 }
 0x8ef   :  { %v180_v42 = vadd.f32 %v1603_v22, %v1605_v23 }
 0x8f8   :  { %v1339_v43 = vpop.eup %1338 }
 0x8f9   :  { %471 = vrot.lane.b32.xlu1 %v1339_v43, %s1456_s28 }
 0x8fa   :  { %v1341_v46 = vpop.eup %1340 }
 0x8fb   :  { %v465_v47 = vadd.f32 1.0, %v1341_v46 }
 0x8fd   :  { %1342 = vrcp.f32 %v465_v47 }
 0x90a   :  { %v1343_v48 = vpop.eup %1342 }
 0x90b   :  { %v469_v51 = vmul.f32 %v1343_v48, %v407_v31 }
 0x96b   :  { %v472_v49 = vpop.permute.xlu1 %471 }
 0x96c   :  { %v474_v50 = vmul.f32 %v1343_v48, %v472_v49 }
 0x96e   :  { %476 = vrot.lane.b32.xlu0 %v474_v50, %s1456_s28 }
 0x9e0   :  { %v477_v52 = vpop.permute.xlu0 %476 }
 0x9e1   :  { %v479_v53 = vadd.f32 %v477_v52, %v469_v51 }
 0x9e3   :  { %1344 = vtanh.f32 %v479_v53 }
 0x9f0   :  { %v1345_v54 = vpop.eup %1344 }
 0x9f1   :  { %482 = vrot.lane.b32.xlu1 %v1345_v54, %s1456_s28 }
 0xa63   :  { %v483_v55 = vpop.permute.xlu1 %482 }
 0xa64   :  { %v1673_v56 = vmul.f32 %v1343_v48, %v483_v55 }
 0xa66   :  { %v486_v57 = vpack.c.bf16 %v1673_v56, %v1673_v56 }
 0xa68   :  { %488 = vrot.lane.b32.xlu0 %v486_v57, %s1457_s2 }
 0xada   :  { %v489_v58 = vpop.permute.xlu0 %488 }
 0xadb   :  { %1256 = vmatmul.mubr.msk.bf16.vlgmr.msra.gmra.mxu0 %vm197_vm2, %v489_v58 }
 0xadc   :  { %1268 = vmatpush3.bf16.msra.mxu0 %v1545_v6  ;;  %1271 = vmatprep.mubr.msk.bf16.mxu0 %vm1455_vm1, %v1454_v11 }
 0xadd   :  { %1269 = vmatprep.subr.bf16.mxu0 %v1454_v11 }
 0xae0   :  { %1270 = vmatpush3.bf16.msra.mxu0 %v1568_v14 }
 0xb9b   :  { %v527_v60 = vpop.f32.mrf.mxu0 }
 0xb9c   :  { %v533_v61 = vadd.f32 %v527_v60, %v170_v59 }
 0xb9d   :  { %v1257_v62 = vpop.f32.mrf.mxu0 }
 0xb9e   :  { %1346 = vtanh.f32 %v533_v61  ;;  %v1139_v2 = vmul.f32 -1.442695, %v533_v61 }
 0xb9f   :  { %v530_v63 = vpop.f32.mrf.mxu0 }
 0xba0   :  { %1348 = vpow2.f32 %v1139_v2 }
 0xba1   :  { %v1258_v0 = vpop.f32.mrf.mxu0 }
 0xba2   :  { %v185_v0 = vadd.f32 %v1598_v20, %v1603_v22  ;;  %v787_v20 = vld [vmem:[%s1892_s6 + $0x18] sm:$0xff]  ;;  %v786_v22 = vld [vmem:[%s1892_s6 + $0x10] sm:$0xff] }
 0xba3   :  { %1283 = vmatprep.subr.mxu0 %v787_v20 }
 0xbab   :  { %v1347_v1 = vpop.eup %1346 }
 0xbac   :  { %543 = vrot.lane.b32.xlu1 %v1347_v1, %s1456_s28 }
 0xbad   :  { %v1349_v4 = vpop.eup %1348 }
 0xbae   :  { %v537_v5 = vadd.f32 1.0, %v1349_v4 }
 0xbb0   :  { %1350 = vrcp.f32 %v537_v5 }
 0xbbd   :  { %v1351_v7 = vpop.eup %1350 }
 0xbbe   :  { %v541_v18 = vmul.f32 %v1351_v7, %v479_v53 }
 0xc1e   :  { %v544_v8 = vpop.permute.xlu1 %543 }
 0xc1f   :  { %v546_v9 = vmul.f32 %v1351_v7, %v544_v8 }
 0xc21   :  { %548 = vrot.lane.b32.xlu0 %v546_v9, %s1456_s28 }
 0xc93   :  { %v549_v10 = vpop.permute.xlu0 %548 }
 0xc94   :  { %v551_v12 = vadd.f32 %v549_v10, %v541_v18 }
 0xc96   :  { %1352 = vtanh.f32 %v551_v12 }
 0xca3   :  { %v1353_v13 = vpop.eup %1352 }
 0xca4   :  { %554 = vrot.lane.b32.xlu1 %v1353_v13, %s1456_s28 }
 0xd16   :  { %v555_v15 = vpop.permute.xlu1 %554 }
 0xd17   :  { %v1689_v16 = vmul.f32 %v1351_v7, %v555_v15 }
 0xd19   :  { %v558_v19 = vpack.c.bf16 %v1689_v16, %v1689_v16 }
 0xd1b   :  { %560 = vrot.lane.b32.xlu0 %v558_v19, %s1457_s2 }
 0xd8d   :  { %v561_v21 = vpop.permute.xlu0 %560 }
 0xd8e   :  { %1264 = vmatmul.mubr.msk.bf16.vlgmr.msra.gmra.mxu1 %vm197_vm2, %v561_v21  ;;  %v785_v21 = vld [vmem:[%s1892_s6 + $0x8] sm:$0xff] }
 0xd8f   :  { %1276 = vmatpush3.bf16.msra.mxu1 %v1545_v6  ;;  %1279 = vmatprep.mubr.msk.bf16.mxu1 %vm1455_vm1, %v1454_v11 }
 0xd90   :  { %1277 = vmatprep.subr.bf16.mxu1 %v1454_v11 }
 0xd93   :  { %1278 = vmatpush3.bf16.msra.mxu1 %v1568_v14 }
 0xe4e   :  { %v599_v25 = vpop.f32.mrf.mxu1 }
 0xe4f   :  { %v605_v26 = vadd.f32 %v599_v25, %v175_v24  ;;  %v784_v24 = vld [vmem:[%s1892_s6] sm:$0xff] }
 0xe50   :  { %v1265_v27 = vpop.f32.mrf.mxu1 }
 0xe51   :  { %1354 = vtanh.f32 %v605_v26  ;;  %v1141_v6 = vmul.f32 -1.442695, %v605_v26 }
 0xe52   :  { %v602_v28 = vpop.f32.mrf.mxu1 }
 0xe53   :  { %1356 = vpow2.f32 %v1141_v6 }
 0xe54   :  { %v1266_v29 = vpop.f32.mrf.mxu1 }
 0xe5e   :  { %v1355_v30 = vpop.eup %1354 }
 0xe5f   :  { %615 = vrot.lane.b32.xlu1 %v1355_v30, %s1456_s28 }
 0xe60   :  { %v1357_v31 = vpop.eup %1356 }
 0xe61   :  { %v609_v32 = vadd.f32 1.0, %v1357_v31 }
 0xe63   :  { %1358 = vrcp.f32 %v609_v32  ;;  %v1146_v32 = vld [vmem:[%s1893_s7] ss:$0 sm:$0xff]  ;;  %s1458_s7 = smov 96  }
 0xe70   :  { %v1359_v11 = vpop.eup %1358 }
 0xe71   :  { %v613_v17 = vmul.f32 %v1359_v11, %v551_v12 }
 0xed1   :  { %v616_v33 = vpop.permute.xlu1 %615 }
 0xed2   :  { %v618_v14 = vmul.f32 %v1359_v11, %v616_v33 }
 0xed4   :  { %620 = vrot.lane.b32.xlu0 %v618_v14, %s1456_s28 }
 0xf46   :  { %v621_v35 = vpop.permute.xlu0 %620 }
 0xf47   :  { %v623_v36 = vadd.f32 %v621_v35, %v613_v17 }
 0xf49   :  { %1360 = vtanh.f32 %v623_v36 }
 0xf56   :  { %v1361_v37 = vpop.eup %1360 }
 0xf57   :  { %626 = vrot.lane.b32.xlu1 %v1361_v37, %s1456_s28 }
 0xfc9   :  { %v627_v38 = vpop.permute.xlu1 %626 }
 0xfca   :  { %v1705_v39 = vmul.f32 %v1359_v11, %v627_v38 }
 0xfcc   :  { %v630_v40 = vpack.c.bf16 %v1705_v39, %v1705_v39 }
 0xfce   :  { %632 = vrot.lane.b32.xlu0 %v630_v40, %s1457_s2 }
0x1040   :  { %v633_v41 = vpop.permute.xlu0 %632 }
0x1041   :  { %1272 = vmatmul.mubr.msk.bf16.vlgmr.msra.gmra.mxu0 %vm197_vm2, %v633_v41 }
0x1042   :  { %1284 = vmatpush3.msra.mxu0 %v787_v20 }
0x1043   :  { %1285 = vmatprep.subr.mxu0 %v786_v22 }
0x1044   :  { %1286 = vmatpush3.msra.mxu0 %v786_v22 }
0x1045   :  { %1287 = vmatprep.subr.mxu0 %v785_v21 }
0x1046   :  { %1288 = vmatpush3.msra.mxu0 %v785_v21 }
0x1047   :  { %1289 = vmatprep.subr.mxu0 %v784_v24 }
0x1048   :  { %1290 = vmatpush3.msra.mxu0 %v784_v24 }
0x1101   :  { %v671_v43 = vpop.f32.mrf.mxu0 }
0x1102   :  { %v677_v45 = vadd.f32 %v671_v43, %v180_v42 }
0x1103   :  { %v1273_v46 = vpop.f32.mrf.mxu0 }
0x1104   :  { %1362 = vtanh.f32 %v677_v45  ;;  %v1143_v50 = vmul.f32 -1.442695, %v677_v45 }
0x1105   :  { %v674_v47 = vpop.f32.mrf.mxu0 }
0x1106   :  { %1364 = vpow2.f32 %v1143_v50 }
0x1107   :  { %v1274_v48 = vpop.f32.mrf.mxu0 }
0x1111   :  { %v1363_v49 = vpop.eup %1362 }
0x1112   :  { %687 = vrot.lane.b32.xlu1 %v1363_v49, %s1456_s28 }
0x1113   :  { %v1365_v51 = vpop.eup %1364 }
0x1114   :  { %v681_v52 = vadd.f32 1.0, %v1365_v51 }
0x1116   :  { %1366 = vrcp.f32 %v681_v52 }
0x1123   :  { %v1367_v53 = vpop.eup %1366 }
0x1124   :  { %v685_v23 = vmul.f32 %v1367_v53, %v623_v36 }
0x1184   :  { %v688_v54 = vpop.permute.xlu1 %687 }
0x1185   :  { %v690_v55 = vmul.f32 %v1367_v53, %v688_v54 }
0x1187   :  { %692 = vrot.lane.b32.xlu0 %v690_v55, %s1456_s28 }
0x11f9   :  { %v693_v57 = vpop.permute.xlu0 %692 }
0x11fa   :  { %v695_v58 = vadd.f32 %v693_v57, %v685_v23 }
0x11fc   :  { %1368 = vtanh.f32 %v695_v58 }
0x1209   :  { %v1369_v59 = vpop.eup %1368 }
0x120a   :  { %698 = vrot.lane.b32.xlu1 %v1369_v59, %s1456_s28 }
0x127c   :  { %v699_v60 = vpop.permute.xlu1 %698 }
0x127d   :  { %v701_v61 = vmul.f32 %v1367_v53, %v699_v60 }
0x127f   :  { %v702_v62 = vpack.c.bf16 %v701_v61, %v701_v61 }
0x1281   :  { %704 = vrot.lane.b32.xlu0 %v702_v62, %s1457_s2 }
0x12f3   :  { %v705_v63 = vpop.permute.xlu0 %704 }
0x12f4   :  { %1280 = vmatmul.mubr.msk.bf16.vlgmr.msra.gmra.mxu1 %vm197_vm2, %v705_v63 }
0x13b4   :  { %v743_v1 = vpop.f32.mrf.mxu1 }
0x13b5   :  { %v749_v2 = vadd.f32 %v743_v1, %v185_v0 }
0x13b6   :  { %v1281_v4 = vpop.f32.mrf.mxu1 }
0x13b7   :  { %1370 = vtanh.f32 %v749_v2  ;;  %v1145_v9 = vmul.f32 -1.442695, %v749_v2 }
0x13b8   :  { %v746_v5 = vpop.f32.mrf.mxu1 }
0x13b9   :  { %1372 = vpow2.f32 %v1145_v9 }
0x13ba   :  { %v1282_v7 = vpop.f32.mrf.mxu1 }
0x13c4   :  { %v1371_v8 = vpop.eup %1370 }
0x13c5   :  { %759 = vrot.lane.b32.xlu1 %v1371_v8, %s1456_s28 }
0x13c6   :  { %v1373_v18 = vpop.eup %1372 }
0x13c7   :  { %v753_v10 = vadd.f32 1.0, %v1373_v18 }
0x13c9   :  { %1374 = vrcp.f32 %v753_v10 }
0x13d6   :  { %v1375_v12 = vpop.eup %1374 }
0x1437   :  { %v760_v13 = vpop.permute.xlu1 %759 }
0x1438   :  { %v762_v15 = vmul.f32 %v1375_v12, %v760_v13 }
0x143a   :  { %764 = vrot.lane.b32.xlu0 %v762_v15, %s1456_s28 }
0x143e   :  { %802 = vrot.lane.b32.xlu0 %v1615_v44, %s1457_s2  ;;  %v757_v44 = vmul.f32 %v1375_v12, %v695_v58 }
0x1442   :  { %806 = vrot.lane.b32.xlu0 %v1657_v34, %s1457_s2 }
0x1446   :  { %810 = vrot.lane.b32.xlu0 %v1689_v16, %s1457_s2 }
0x144a   :  { %814 = vrot.lane.b32.xlu0 %v701_v61, %s1457_s2 }
0x14ac   :  { %v765_v19 = vpop.permute.xlu0 %764 }
0x14ad   :  { %v1735_v34 = vadd.f32 %v765_v19, %v757_v44 }
0x14af   :  { %1376 = vtanh.f32 %v1735_v34 }
0x14b0   :  { %v803_v16 = vpop.permute.xlu0 %802 }
0x14b1   :  { %1291 = vmatprep.mubr.msk.f32.mxu0 %vm197_vm2, %v803_v16 }
0x14b4   :  { %v807_v27 = vpop.permute.xlu0 %806 }
0x14b8   :  { %v811_v30 = vpop.permute.xlu0 %810 }
0x14bc   :  { %v1377_v25 = vpop.eup %1376 }
0x14bd   :  { %770 = vrot.lane.b32.xlu1 %v1377_v25, %s1456_s28 }
0x14c1   :  { %804 = vrot.lane.b32.xlu1 %v1641_v3, %s1457_s2 }
0x14c5   :  { %808 = vrot.lane.b32.xlu1 %v1673_v56, %s1457_s2  ;;  %v815_v56 = vpop.permute.xlu0 %814 }
0x14c9   :  { %812 = vrot.lane.b32.xlu1 %v1705_v39, %s1457_s2 }
0x152f   :  { %v771_v26 = vpop.permute.xlu1 %770 }
0x1530   :  { %v773_v28 = vmul.f32 %v1375_v12, %v771_v26 }
0x1532   :  { %775 = vrot.lane.b32.xlu1 %v773_v28, %s1457_s2 }
0x1533   :  { %v805_v29 = vpop.permute.xlu1 %804 }
0x1534   :  { %1292 = vmatmul.mubr.msk.f32.vlgmr.msra.gmra.mxu0 %vm197_vm2, %v805_v29 }
0x1535   :  { %1294 = vmatprep.mubr.msk.f32.mxu0 %vm197_vm2, %v807_v27 }
0x1537   :  { %v809_v6 = vpop.permute.xlu1 %808 }
0x1538   :  { %1295 = vmatmul.mubr.msk.f32.gmra.mxu0 %vm197_vm2, %v809_v6 }
0x1539   :  { %1297 = vmatprep.mubr.msk.f32.mxu0 %vm197_vm2, %v811_v30 }
0x153b   :  { %v813_v3 = vpop.permute.xlu1 %812 }
0x153c   :  { %1298 = vmatmul.mubr.msk.f32.gmra.mxu0 %vm197_vm2, %v813_v3 }
0x153d   :  { %1300 = vmatprep.mubr.msk.f32.mxu0 %vm197_vm2, %v815_v56 }
0x15a4   :  { %v776_v31 = vpop.permute.xlu1 %775 }
0x15a5   :  { %778 = vst.msk [vmem:[#allocation2] sm:$0xff] %vm197_vm2, %v776_v31  ;;  %1301 = vmatmul.mubr.msk.f32.gmra.mxu0 %vm197_vm2, %v776_v31 }
0x15f4   :  { %v1293_v11 = vpop.f32.mrf.mxu0 }
0x15f5   :  { %v904_v33 = vadd.f32 %v1293_v11, %v1146_v32 }
0x15f6   :  { %v898_v14 = vpop.f32.mrf.mxu0 }
0x15f7   :  { %v899_v17 = vadd.f32 %v1146_v32, %v898_v14  ;;  %v941_v35 = vsel %vm937_vm3, %v904_v33, 0.0 }
0x15f8   :  { %942 = vadd.xlane.f32.xlu1 %v941_v35  ;;  %v1296_v36 = vpop.f32.mrf.mxu0 }
0x15f9   :  { %v938_v37 = vsel %vm937_vm3, %v899_v17, 0.0  ;;  %v914_v41 = vadd.f32 %v1296_v36, %v1146_v32 }
0x15fa   :  { %939 = vadd.xlane.f32.xlu0 %v938_v37  ;;  %v908_v38 = vpop.f32.mrf.mxu0 }
0x15fb   :  { %v909_v39 = vadd.f32 %v1146_v32, %v908_v38  ;;  %v947_v47 = vsel %vm937_vm3, %v914_v41, 0.0 }
0x15fc   :  { %v1299_v40 = vpop.f32.mrf.mxu0 }
0x15fd   :  { %v944_v42 = vsel %vm937_vm3, %v909_v39, 0.0  ;;  %v924_v46 = vadd.f32 %v1299_v40, %v1146_v32 }
0x15fe   :  { %945 = vadd.xlane.f32.xlu0 %v944_v42  ;;  %v918_v43 = vpop.f32.mrf.mxu0 }
0x15ff   :  { %v919_v45 = vadd.f32 %v1146_v32, %v918_v43  ;;  %v953_v49 = vsel %vm937_vm3, %v924_v46, 0.0 }
0x1601   :  { %v950_v48 = vsel %vm937_vm3, %v919_v45, 0.0 }
0x1602   :  { %948 = vadd.xlane.f32.xlu0 %v947_v47  ;;  %951 = vadd.xlane.f32.xlu1 %v950_v48 }
0x1606   :  { %954 = vadd.xlane.f32.xlu0 %v953_v49 }
0x1665   :  { %v1302_v50 = vpop.f32.mrf.mxu0 }
0x1666   :  { %v934_v51 = vadd.f32 %v1302_v50, %v1146_v32 }
0x1667   :  { %v928_v52 = vpop.f32.mrf.mxu0 }
0x1668   :  { %v929_v53 = vadd.f32 %v1146_v32, %v928_v52  ;;  %v959_v54 = vsel %vm937_vm3, %v934_v51, 0.0 }
0x1669   :  { %960 = vadd.xlane.f32.xlu0 %v959_v54  ;;  %v1822_v54 = vld [vmem:[%s1895_s9] ss:$0 sm:$0xff] }
0x166a   :  { %v956_v55 = vsel %vm937_vm3, %v929_v53, 0.0 }
0x166b   :  { %957 = vadd.xlane.f32.xlu1 %v956_v55 }
0x1681   :  { %v943_v23 = vpop.xlane.xlu1 %942 }
0x1682   :  { %v964_v57 = vmul.f32 0.25, %v943_v23 }
0x1683   :  { %v940_v58 = vpop.xlane.xlu0 %939 }
0x1684   :  { %v1772_v59 = vsub.f32 %v904_v33, %v964_v57  ;;  %v963_v60 = vmul.f32 0.25, %v940_v58 }
0x1686   :  { %v1774_v61 = vsub.f32 %v899_v17, %v963_v60  ;;  %v980_v62 = vmul.f32 %v1772_v59, %v1772_v59 }
0x1687   :  { %v946_v63 = vpop.xlane.xlu0 %945 }
0x1688   :  { %v965_v0 = vmul.f32 0.25, %v946_v63  ;;  %v990_v1 = vsel %vm937_vm3, %v980_v62, 0.0  ;;  %v979_v2 = vmul.f32 %v1774_v61, %v1774_v61 }
0x1689   :  { %991 = vadd.xlane.f32.xlu0 %v990_v1 }
0x168a   :  { %v1781_v4 = vsub.f32 %v909_v39, %v965_v0  ;;  %v987_v5 = vsel %vm937_vm3, %v979_v2, 0.0 }
0x168b   :  { %v949_v7 = vpop.xlane.xlu0 %948  ;;  %988 = vadd.xlane.f32.xlu1 %v987_v5  ;;  %v952_v8 = vpop.xlane.xlu1 %951 }
0x168c   :  { %v966_v9 = vmul.f32 0.25, %v949_v7  ;;  %v967_v18 = vmul.f32 0.25, %v952_v8  ;;  %v981_v10 = vmul.f32 %v1781_v4, %v1781_v4 }
0x168e   :  { %v1786_v12 = vsub.f32 %v914_v41, %v966_v9  ;;  %v1788_v13 = vsub.f32 %v919_v45, %v967_v18  ;;  %v993_v15 = vsel %vm937_vm3, %v981_v10, 0.0 }
0x168f   :  { %v955_v20 = vpop.xlane.xlu0 %954  ;;  %994 = vadd.xlane.f32.xlu1 %v993_v15 }
0x1690   :  { %v968_v22 = vmul.f32 0.25, %v955_v20  ;;  %v982_v44 = vmul.f32 %v1786_v12, %v1786_v12  ;;  %v983_v19 = vmul.f32 %v1788_v13, %v1788_v13 }
0x1692   :  { %v1795_v16 = vsub.f32 %v924_v46, %v968_v22  ;;  %v996_v21 = vsel %vm937_vm3, %v982_v44, 0.0  ;;  %v999_v24 = vsel %vm937_vm3, %v983_v19, 0.0 }
0x1693   :  { %997 = vadd.xlane.f32.xlu0 %v996_v21  ;;  %1000 = vadd.xlane.f32.xlu1 %v999_v24 }
0x1694   :  { %v984_v25 = vmul.f32 %v1795_v16, %v1795_v16 }
0x1696   :  { %v1002_v26 = vsel %vm937_vm3, %v984_v25, 0.0 }
0x1697   :  { %1003 = vadd.xlane.f32.xlu0 %v1002_v26 }
0x16f2   :  { %v961_v27 = vpop.xlane.xlu0 %960 }
0x16f3   :  { %v970_v28 = vmul.f32 0.25, %v961_v27 }
0x16f4   :  { %v958_v29 = vpop.xlane.xlu1 %957 }
0x16f5   :  { %v1802_v30 = vsub.f32 %v934_v51, %v970_v28  ;;  %v969_v6 = vmul.f32 0.25, %v958_v29  ;;  %v1816_v51 = vld [vmem:[%s1894_s8] ss:$0 sm:$0xff]  ;;  %s1459_s8 = smov [#allocation2]  }
0x16f6   :  { %s1097_s26 = sshll.u32 %s1459_s8, 4  ;;  %s1098_s26 = int_to_ptr.vmem [resolvable:$true] %s1097_s26 }
0x16f7   :  { %v1804_v3 = vsub.f32 %v929_v53, %v969_v6  ;;  %v986_v56 = vmul.f32 %v1802_v30, %v1802_v30  ;;  %s1410_s9 = scalar_lea.vmem %s1098_s26, 128  ;;  %p1415_p1 = scmp.lt.s32.totalorder %s1098_s26, %s1098_s26 }
0x16f8   :  { %p1411_p0 = scmp.ne.s32.totalorder %s1098_s26, %s1410_s9  ;;  %p1416_p2 = scmp.lt.s32.totalorder %s1410_s9, %s1410_s9 }
0x16f9   :  { %v1008_v31 = vsel %vm937_vm3, %v986_v56, 0.0  ;;  %v985_v32 = vmul.f32 %v1804_v3, %v1804_v3 }
0x16fa   :  { %1009 = vadd.xlane.f32.xlu0 %v1008_v31  ;;  %p1417_p3 = por %p1416_p2, %p1415_p1 }
0x16fb   :  { %v1005_v11 = vsel %vm937_vm3, %v985_v32, 0.0 }
0x16fc   :  { %1006 = vadd.xlane.f32.xlu1 %v1005_v11  ;;  %p1418_p4 = pnand %p1417_p3, %p1411_p0 }
0x170d   :  { %780 = vrot.lane.b32.xlu1 %v1735_v34, %s1458_s7 }
0x1712   :  { %v992_v33 = vpop.xlane.xlu0 %991 }
0x1713   :  { %v1012_v14 = vmul.f32 0.25, %v992_v33 }
0x1714   :  { %v989_v17 = vpop.xlane.xlu1 %988 }
0x1715   :  { %v1020_v35 = vadd.f32 1e-05, %v1012_v14  ;;  %v1011_v36 = vmul.f32 0.25, %v989_v17 }
0x1717   :  { %1378 = vrsqrt.f32 %v1020_v35  ;;  %v1019_v37 = vadd.f32 1e-05, %v1011_v36 }
0x1718   :  { %v995_v38 = vpop.xlane.xlu1 %994 }
0x1719   :  { %1380 = vrsqrt.f32 %v1019_v37  ;;  %v1013_v39 = vmul.f32 0.25, %v995_v38 }
0x171b   :  { %v1021_v40 = vadd.f32 1e-05, %v1013_v39 }
0x171c   :  { %v998_v41 = vpop.xlane.xlu0 %997  ;;  %v1001_v42 = vpop.xlane.xlu1 %1000 }
0x171d   :  { %1382 = vrsqrt.f32 %v1021_v40  ;;  %v1014_v43 = vmul.f32 0.25, %v998_v41  ;;  %v1015_v45 = vmul.f32 0.25, %v1001_v42 }
0x171f   :  { %v1022_v46 = vadd.f32 1e-05, %v1014_v43  ;;  %v1023_v47 = vadd.f32 1e-05, %v1015_v45 }
0x1720   :  { %v1004_v48 = vpop.xlane.xlu0 %1003 }
0x1721   :  { %1384 = vrsqrt.f32 %v1022_v46  ;;  %v1016_v34 = vmul.f32 0.25, %v1004_v48 }
0x1722   :  { %1386 = vrsqrt.f32 %v1023_v47 }
0x1723   :  { %v1024_v49 = vadd.f32 1e-05, %v1016_v34 }
0x1724   :  { %v1379_v50 = vpop.eup %1378 }
0x1725   :  { %v1036_v52 = vmul.f32 %v1379_v50, %v1772_v59  ;;  %1388 = vrsqrt.f32 %v1024_v49 }
0x1726   :  { %v1381_v53 = vpop.eup %1380 }
0x1727   :  { %v1051_v55 = vmul.f32 %v1816_v51, %v1036_v52  ;;  %v1035_v23 = vmul.f32 %v1381_v53, %v1774_v61 }
0x1729   :  { %v1066_v57 = vadd.f32 %v1822_v54, %v1051_v55  ;;  %v1050_v58 = vmul.f32 %v1816_v51, %v1035_v23 }
0x172a   :  { %v1383_v60 = vpop.eup %1382 }
0x172b   :  { %1390 = vtanh.f32 %v1066_v57  ;;  %v1065_v62 = vadd.f32 %v1822_v54, %v1050_v58  ;;  %v1037_v59 = vmul.f32 %v1383_v60, %v1781_v4 }
0x172d   :  { %1392 = vtanh.f32 %v1065_v62  ;;  %v1052_v63 = vmul.f32 %v1816_v51, %v1037_v59 }
0x172e   :  { %1421 = shalt.err (!%p1418_p4)
}
0x172f   :  { %1100 = dma.vmem_to_hbm [thread:$0]  %s1098_s26, 128, %s1897_s11, [#allocation3]   ;;  %v1385_v61 = vpop.eup %1384  ;;  %v1067_v1 = vadd.f32 %v1822_v54, %v1052_v63 }
0x1730   :  { %v1387_v0 = vpop.eup %1386  ;;  %v1038_v2 = vmul.f32 %v1385_v61, %v1786_v12  ;;  %s1460_s17 = smov [#allocation4]  }
0x1731   :  { %v1039_v4 = vmul.f32 %v1387_v0, %v1788_v13  ;;  %1394 = vtanh.f32 %v1067_v1  ;;  %s1107_s18 = sshll.u32 %s1460_s17, 4  ;;  %s1108_s18 = int_to_ptr.vmem [resolvable:$true] %s1107_s18 }
0x1732   :  { %v1053_v5 = vmul.f32 %v1816_v51, %v1038_v2  ;;  %v1389_v7 = vpop.eup %1388  ;;  %s1430_s19 = scalar_lea.vmem %s1108_s18, 128  ;;  %p1435_p6 = scmp.lt.s32.totalorder %s1108_s18, %s1108_s18 }
0x1733   :  { %v1054_v8 = vmul.f32 %v1816_v51, %v1039_v4  ;;  %v1040_v18 = vmul.f32 %v1389_v7, %v1795_v16  ;;  %p1431_p5 = scmp.ne.s32.totalorder %s1108_s18, %s1430_s19  ;;  %p1436_p7 = scmp.lt.s32.totalorder %s1430_s19, %s1430_s19 }
0x1734   :  { %v1068_v9 = vadd.f32 %v1822_v54, %v1053_v5 }
0x1735   :  { %v1069_v10 = vadd.f32 %v1822_v54, %v1054_v8  ;;  %v1055_v15 = vmul.f32 %v1816_v51, %v1040_v18  ;;  %p1437_p8 = por %p1436_p7, %p1435_p6 }
0x1736   :  { %1396 = vtanh.f32 %v1068_v9 }
0x1737   :  { %1398 = vtanh.f32 %v1069_v10  ;;  %v1070_v12 = vadd.f32 %v1822_v54, %v1055_v15  ;;  %p1438_p9 = pnand %p1437_p8, %p1431_p5 }
0x1738   :  { %v1391_v20 = vpop.eup %1390 }
0x1739   :  { %1082 = vst.msk [vmem:[%s1896_s10 + $0x8] sm:$0xff] %vm937_vm3, %v1391_v20  ;;  %1400 = vtanh.f32 %v1070_v12 }
0x173a   :  { %v1393_v13 = vpop.eup %1392 }
0x173b   :  { %1081 = vst.msk [vmem:[%s1896_s10] sm:$0xff] %vm937_vm3, %v1393_v13 }
0x173e   :  { %v1395_v22 = vpop.eup %1394 }
0x173f   :  { %1083 = vst.msk [vmem:[%s1896_s10 + $0x10] sm:$0xff] %vm937_vm3, %v1395_v22 }
0x1743   :  { %v1397_v44 = vpop.eup %1396 }
0x1744   :  { %v1399_v19 = vpop.eup %1398  ;;  %1084 = vst.msk [vmem:[%s1896_s10 + $0x18] sm:$0xff] %vm937_vm3, %v1397_v44 }
0x1745   :  { %1085 = vst.msk [vmem:[%s1896_s10 + $0x20] sm:$0xff] %vm937_vm3, %v1399_v19 }
0x1746   :  { %v1401_v16 = vpop.eup %1400 }
0x1747   :  { %1086 = vst.msk [vmem:[%s1896_s10 + $0x28] sm:$0xff] %vm937_vm3, %v1401_v16 }
0x1783   :  { %v1010_v21 = vpop.xlane.xlu0 %1009 }
0x1784   :  { %v1018_v24 = vmul.f32 0.25, %v1010_v21 }
0x1785   :  { %v1007_v25 = vpop.xlane.xlu1 %1006 }
0x1786   :  { %v1026_v26 = vadd.f32 1e-05, %v1018_v24  ;;  %v1017_v27 = vmul.f32 0.25, %v1007_v25 }
0x1788   :  { %1402 = vrsqrt.f32 %v1026_v26  ;;  %v1025_v28 = vadd.f32 1e-05, %v1017_v27 }
0x1789   :  { %v781_v29 = vpop.permute.xlu1 %780 }
0x178a   :  { %1404 = vrsqrt.f32 %v1025_v28  ;;  %783 = vst.msk [vmem:[#allocation4] sm:$0xff] %vm197_vm2, %v781_v29 }
0x178b   :  { %1441 = shalt.err (!%p1438_p9)
}
0x178c   :  { %1110 = dma.vmem_to_hbm [thread:$0]  %s1108_s18, 128, %s1898_s12, [#allocation5]  }
0x1795   :  { %v1403_v6 = vpop.eup %1402 }
0x1796   :  { %v1042_v56 = vmul.f32 %v1403_v6, %v1802_v30 }
0x1797   :  { %v1405_v31 = vpop.eup %1404 }
0x1798   :  { %v1057_v32 = vmul.f32 %v1816_v51, %v1042_v56  ;;  %v1041_v11 = vmul.f32 %v1405_v31, %v1804_v3 }
0x179a   :  { %v1072_v33 = vadd.f32 %v1822_v54, %v1057_v32  ;;  %v1056_v14 = vmul.f32 %v1816_v51, %v1041_v11 }
0x179c   :  { %1406 = vtanh.f32 %v1072_v33  ;;  %v1071_v17 = vadd.f32 %v1822_v54, %v1056_v14 }
0x179e   :  { %1408 = vtanh.f32 %v1071_v17 }
0x17a9   :  { %v1407_v35 = vpop.eup %1406 }
0x17aa   :  { %1088 = vst.msk [vmem:[%s1896_s10 + $0x38] sm:$0xff] %vm937_vm3, %v1407_v35 }
0x17ab   :  { %v1409_v30 = vpop.eup %1408 }
0x17ac   :  { %1087 = vst.msk [vmem:[%s1896_s10 + $0x30] sm:$0xff] %vm937_vm3, %v1409_v30 }
0x17ad   :  { %1450 = dma.done.wait [#allocation3], 128  }
0x17ae   :  { %1451 = vsyncadd [#allocation3], 4294967168 }
0x17af   :  { %1452 = dma.done.wait [#allocation5], 128  }
0x17b0   :  { %1453 = vsyncadd [#allocation5], 4294967168 }
0x17b1   :  { %1119 = vsyncpa [#allocation3], 1 }
0x17b2   :  { %1120 = vsyncpa [#allocation5], 1 }

</bundles_post_ra>
